<compile_context>
chip_gen: v7x
topology: tpu7x:2x2x1
jax: 0.10.0
libtpu: 0.0.40
codegen_flags: <defaults>
</compile_context>

<pallas_src>
import functools

import jax
import jax.numpy as jnp
from jax.experimental import pallas as pl
from jax.experimental.pallas import tpu as pltpu


NUM_SPLITS = 2      # leading "parallel" grid axis (feeds both TCs on v7x)
MAX_TILE_S = 2048   # lane tile-size cap (multiple of 128); keeps VMEM tiny


def _cdiv(a, b):
    return (a + b - 1) // b


def _round_up(a, b):
    return _cdiv(a, b) * b


def _soft_iou_tile_kernel(x_ref, t_ref, inter_ref, union_ref, bce_ref, *,
                          valid_s, tile_s, tiles_per_split, need_mask):
    p = pl.program_id(0)          # spatial split (parallel)
    k = pl.program_id(1)          # spatial tile within the split (arbitrary)

    @pl.when(k == 0)
    def _():
        inter_ref[...] = jnp.zeros_like(inter_ref)
        union_ref[...] = jnp.zeros_like(union_ref)
        bce_ref[...] = jnp.zeros_like(bce_ref)

    x = x_ref[...].astype(jnp.float32)        # (N, C, tile_s)
    t = t_ref[...].astype(jnp.float32)

    # Softmax over the channel axis.  Inputs are probabilities in (0, 1)
    # (nn.BCELoss requirement), so exp cannot overflow -> no max-subtraction.
    e = jnp.exp(x)
    pred = e / jnp.sum(e, axis=1, keepdims=True)

    pt = pred * t
    union_el = pred + t - pt
    # One log per element instead of two; exact for binary / one-hot targets
    # (the module's to_one_hot path).  Matches PyTorch's per-term clamp at -100.
    # TODO(synk): for non-binary (soft) targets fall back to the two-log form.
    bce_el = -jnp.maximum(jnp.log(jnp.where(t > 0.5, x, 1.0 - x)), -100.0)

    if need_mask:
        start = (p * tiles_per_split + k) * tile_s
        lane = jax.lax.broadcasted_iota(jnp.int32, x.shape, 2)
        mask = (lane + start < valid_s).astype(jnp.float32)
        pt = pt * mask
        union_el = union_el * mask
        bce_el = bce_el * mask

    inter_ref[...] += jnp.sum(pt, axis=2)          # (N, C)
    union_ref[...] += jnp.sum(union_el, axis=2)    # (N, C)
    bce_ref[...] += jnp.sum(bce_el, axis=2)        # (N, C)


def soft_iou_loss(inputs, target, *, lamda):
    """inputs, target: (N, C, H, W) arrays (NCHW). Returns scalar f32 loss."""
    N, C, H, W = inputs.shape
    S = H * W

    # No dtype upcast here: keep HBM traffic at storage precision.
    xf = inputs.reshape(N, C, S)
    tf = target.reshape(N, C, S)

    tile_s = min(MAX_TILE_S, _round_up(_cdiv(S, NUM_SPLITS), 128))
    tiles_per_split = _cdiv(S, NUM_SPLITS * tile_s)
    s_pad = NUM_SPLITS * tiles_per_split * tile_s
    need_mask = s_pad != S
    if need_mask:
        pad = ((0, 0), (0, 0), (0, s_pad - S))
        xf = jnp.pad(xf, pad)
        tf = jnp.pad(tf, pad)

    spatial_spec = pl.BlockSpec(
        (N, C, tile_s), lambda p, k: (0, 0, p * tiles_per_split + k))
    acc_spec = pl.BlockSpec((None, N, C), lambda p, k: (p, 0, 0))
    acc_shape = jax.ShapeDtypeStruct((NUM_SPLITS, N, C), jnp.float32)

    inter_p, union_p, bce_p = pl.pallas_call(
        functools.partial(
            _soft_iou_tile_kernel, valid_s=S, tile_s=tile_s,
            tiles_per_split=tiles_per_split, need_mask=need_mask),
        grid=(NUM_SPLITS, tiles_per_split),
        in_specs=[spatial_spec, spatial_spec],
        out_specs=[acc_spec, acc_spec, acc_spec],
        out_shape=[acc_shape, acc_shape, acc_shape],
        compiler_params=pltpu.CompilerParams(
            dimension_semantics=("parallel", "arbitrary")),
    )(xf, tf)

    # Tiny finalize in plain JAX: IoU is formed only after the full spatial sum.
    inter = jnp.sum(inter_p, axis=0)             # (N, C)
    union = jnp.sum(union_p, axis=0)             # (N, C)
    iou_mean = jnp.mean(inter / (union + 1e-16))
    bce = jnp.sum(bce_p) / (N * C * S)
    return -lamda * iou_mean + bce


def _reference(inputs, target, lamda):
    # Pure-JAX reference mirroring the PyTorch forward exactly.
    N, C = inputs.shape[0], inputs.shape[1]
    x = inputs.astype(jnp.float32)
    t = target.astype(jnp.float32)
    pred = jax.nn.softmax(x, axis=1)
    inter = (pred * t).reshape(N, C, -1).sum(2)
    union = (pred + t - pred * t).reshape(N, C, -1).sum(2)
    iou = inter / (union + 1e-16)
    log_x = jnp.maximum(jnp.log(x), -100.0)
    log_1mx = jnp.maximum(jnp.log(1.0 - x), -100.0)
    bce = jnp.mean(-(t * log_x + (1.0 - t) * log_1mx))
    return -lamda * jnp.mean(iou) + bce


if __name__ == "__main__":
    # Module hyper-params (deterministic, in-script): n_classes=4, l=0.5
    n_classes = 4
    lamda = 0.5

    N, C, H, W = 2, n_classes, 16, 16
    key = jax.random.PRNGKey(0)
    k_in, k_lbl = jax.random.split(key)

    # BCELoss requires probabilities in (0, 1), so draw inputs accordingly.
    inputs = jax.random.uniform(k_in, (N, C, H, W), jnp.float32,
                                minval=0.01, maxval=0.99)
    # target is already one-hot (as produced by SoftIoULoss.to_one_hot).
    labels = jax.random.randint(k_lbl, (N, H, W), 0, n_classes)
    target = jax.nn.one_hot(labels, n_classes, axis=1, dtype=jnp.float32)

    loss = jax.block_until_ready(soft_iou_loss(inputs, target, lamda=lamda))
    ref = jax.block_until_ready(_reference(inputs, target, lamda))

    assert jnp.allclose(loss, ref, rtol=1e-5, atol=1e-5), (loss, ref)
    print("KERNEL_OK")
</pallas_src>

<mosaic_0001>
module attributes {stable_mosaic.version = 11 : i64} {
  func.func @_soft_iou_tile_kernel(%arg0: i32, %arg1: i32, %arg2: memref<2x4x128xf32, #tpu.memory_space<vmem>>, %arg3: memref<2x4x128xf32, #tpu.memory_space<vmem>>, %arg4: memref<1x2x4xf32, #tpu.memory_space<vmem>>, %arg5: memref<1x2x4xf32, #tpu.memory_space<vmem>>, %arg6: memref<1x2x4xf32, #tpu.memory_space<vmem>>) attributes {dimension_semantics = [#tpu.dimension_semantics<parallel>, #tpu.dimension_semantics<arbitrary>], iteration_bounds = array<i64: 2, 1>, scalar_prefetch = 0 : i64, scratch_operands = 0 : i64, tpu.core_type = #tpu.core_type<tc>, window_params = [{transform_indices = @transform_0, window_bounds = array<i64: 2, 4, 128>}, {transform_indices = @transform_1, window_bounds = array<i64: 2, 4, 128>}, {transform_indices = @transform_2, window_bounds = array<i64: 1, 2, 4>}, {transform_indices = @transform_3, window_bounds = array<i64: 1, 2, 4>}, {transform_indices = @transform_4, window_bounds = array<i64: 1, 2, 4>}]} {
    %c0_i32 = arith.constant 0 : i32
    %0 = arith.cmpi eq, %arg1, %c0_i32 : i32
    %1 = arith.extui %0 : i1 to i32
    %c0_i32_0 = arith.constant 0 : i32
    %2 = arith.cmpi ne, %1, %c0_i32_0 : i32
    scf.if %2 {
      %cst_31 = arith.constant 0.000000e+00 : f32
      %44 = vector.broadcast %cst_31 : f32 to vector<2x4xf32>
      %c0_32 = arith.constant 0 : index
      %c0_33 = arith.constant 0 : index
      %c0_34 = arith.constant 0 : index
      %45 = vector.load %arg4[%c0_32, %c0_33, %c0_34] : memref<1x2x4xf32, #tpu.memory_space<vmem>>, vector<1x2x4xf32>
      %46 = vector.shape_cast %45 : vector<1x2x4xf32> to vector<2x4xf32>
      %47 = vector.shape_cast %44 : vector<2x4xf32> to vector<1x2x4xf32>
      tpu.vector_store %arg4[%c0_32, %c0_33, %c0_34], %47 {strides = array<i32>} : memref<1x2x4xf32, #tpu.memory_space<vmem>>, vector<1x2x4xf32>,
      %cst_35 = arith.constant 0.000000e+00 : f32
      %48 = vector.broadcast %cst_35 : f32 to vector<2x4xf32>
      %c0_36 = arith.constant 0 : index
      %c0_37 = arith.constant 0 : index
      %c0_38 = arith.constant 0 : index
      %49 = vector.load %arg5[%c0_36, %c0_37, %c0_38] : memref<1x2x4xf32, #tpu.memory_space<vmem>>, vector<1x2x4xf32>
      %50 = vector.shape_cast %49 : vector<1x2x4xf32> to vector<2x4xf32>
      %51 = vector.shape_cast %48 : vector<2x4xf32> to vector<1x2x4xf32>
      tpu.vector_store %arg5[%c0_36, %c0_37, %c0_38], %51 {strides = array<i32>} : memref<1x2x4xf32, #tpu.memory_space<vmem>>, vector<1x2x4xf32>,
      %cst_39 = arith.constant 0.000000e+00 : f32
      %52 = vector.broadcast %cst_39 : f32 to vector<2x4xf32>
      %c0_40 = arith.constant 0 : index
      %c0_41 = arith.constant 0 : index
      %c0_42 = arith.constant 0 : index
      %53 = vector.load %arg6[%c0_40, %c0_41, %c0_42] : memref<1x2x4xf32, #tpu.memory_space<vmem>>, vector<1x2x4xf32>
      %54 = vector.shape_cast %53 : vector<1x2x4xf32> to vector<2x4xf32>
      %55 = vector.shape_cast %52 : vector<2x4xf32> to vector<1x2x4xf32>
      tpu.vector_store %arg6[%c0_40, %c0_41, %c0_42], %55 {strides = array<i32>} : memref<1x2x4xf32, #tpu.memory_space<vmem>>, vector<1x2x4xf32>,
    } else {
    }
    %c0 = arith.constant 0 : index
    %c0_1 = arith.constant 0 : index
    %c0_2 = arith.constant 0 : index
    %3 = vector.load %arg2[%c0, %c0_1, %c0_2] : memref<2x4x128xf32, #tpu.memory_space<vmem>>, vector<2x4x128xf32>
    %c0_3 = arith.constant 0 : index
    %c0_4 = arith.constant 0 : index
    %c0_5 = arith.constant 0 : index
    %4 = vector.load %arg3[%c0_3, %c0_4, %c0_5] : memref<2x4x128xf32, #tpu.memory_space<vmem>>, vector<2x4x128xf32>
    %5 = math.exp %3 : vector<2x4x128xf32>
    %cst = arith.constant dense<0.000000e+00> : vector<2x128xf32>
    %6 = vector.multi_reduction <add>, %5, %cst [1] : vector<2x4x128xf32> to vector<2x128xf32>
    %7 = vector.shape_cast %6 : vector<2x128xf32> to vector<2x1x128xf32>
    %8 = vector.broadcast %7 : vector<2x1x128xf32> to vector<2x4x128xf32>
    %9 = arith.divf %5, %8 : vector<2x4x128xf32>
    %10 = arith.mulf %9, %4 : vector<2x4x128xf32>
    %11 = arith.addf %9, %4 : vector<2x4x128xf32>
    %12 = arith.subf %11, %10 : vector<2x4x128xf32>
    %cst_6 = arith.constant 5.000000e-01 : f32
    %13 = vector.broadcast %cst_6 : f32 to vector<2x4x128xf32>
    %14 = arith.cmpf ogt, %4, %13 : vector<2x4x128xf32>
    %cst_7 = arith.constant 1.000000e+00 : f32
    %15 = vector.broadcast %cst_7 : f32 to vector<2x4x128xf32>
    %16 = arith.subf %15, %3 : vector<2x4x128xf32>
    %17 = arith.select %14, %3, %16 : vector<2x4x128xi1>, vector<2x4x128xf32>
    %18 = math.log %17 : vector<2x4x128xf32>
    %cst_8 = arith.constant -1.000000e+02 : f32
    %19 = vector.broadcast %cst_8 : f32 to vector<2x4x128xf32>
    %20 = arith.maximumf %18, %19 : vector<2x4x128xf32>
    %cst_9 = arith.constant 0.000000e+00 : f32
    %21 = vector.broadcast %cst_9 : f32 to vector<2x4x128xf32>
    %22 = arith.subf %21, %20 : vector<2x4x128xf32>
    %c0_10 = arith.constant 0 : index
    %c0_11 = arith.constant 0 : index
    %c0_12 = arith.constant 0 : index
    %23 = vector.load %arg4[%c0_10, %c0_11, %c0_12] : memref<1x2x4xf32, #tpu.memory_space<vmem>>, vector<1x2x4xf32>
    %24 = vector.shape_cast %23 : vector<1x2x4xf32> to vector<2x4xf32>
    %cst_13 = arith.constant dense<0.000000e+00> : vector<2x4xf32>
    %25 = vector.multi_reduction <add>, %10, %cst_13 [2] : vector<2x4x128xf32> to vector<2x4xf32>
    %26 = arith.addf %24, %25 : vector<2x4xf32>
    %c0_14 = arith.constant 0 : index
    %c0_15 = arith.constant 0 : index
    %c0_16 = arith.constant 0 : index
    %27 = vector.load %arg4[%c0_14, %c0_15, %c0_16] : memref<1x2x4xf32, #tpu.memory_space<vmem>>, vector<1x2x4xf32>
    %28 = vector.shape_cast %27 : vector<1x2x4xf32> to vector<2x4xf32>
    %29 = vector.shape_cast %26 : vector<2x4xf32> to vector<1x2x4xf32>
    tpu.vector_store %arg4[%c0_14, %c0_15, %c0_16], %29 {strides = array<i32>} : memref<1x2x4xf32, #tpu.memory_space<vmem>>, vector<1x2x4xf32>,
    %c0_17 = arith.constant 0 : index
    %c0_18 = arith.constant 0 : index
    %c0_19 = arith.constant 0 : index
    %30 = vector.load %arg5[%c0_17, %c0_18, %c0_19] : memref<1x2x4xf32, #tpu.memory_space<vmem>>, vector<1x2x4xf32>
    %31 = vector.shape_cast %30 : vector<1x2x4xf32> to vector<2x4xf32>
    %cst_20 = arith.constant dense<0.000000e+00> : vector<2x4xf32>
    %32 = vector.multi_reduction <add>, %12, %cst_20 [2] : vector<2x4x128xf32> to vector<2x4xf32>
    %33 = arith.addf %31, %32 : vector<2x4xf32>
    %c0_21 = arith.constant 0 : index
    %c0_22 = arith.constant 0 : index
    %c0_23 = arith.constant 0 : index
    %34 = vector.load %arg5[%c0_21, %c0_22, %c0_23] : memref<1x2x4xf32, #tpu.memory_space<vmem>>, vector<1x2x4xf32>
    %35 = vector.shape_cast %34 : vector<1x2x4xf32> to vector<2x4xf32>
    %36 = vector.shape_cast %33 : vector<2x4xf32> to vector<1x2x4xf32>
    tpu.vector_store %arg5[%c0_21, %c0_22, %c0_23], %36 {strides = array<i32>} : memref<1x2x4xf32, #tpu.memory_space<vmem>>, vector<1x2x4xf32>,
    %c0_24 = arith.constant 0 : index
    %c0_25 = arith.constant 0 : index
    %c0_26 = arith.constant 0 : index
    %37 = vector.load %arg6[%c0_24, %c0_25, %c0_26] : memref<1x2x4xf32, #tpu.memory_space<vmem>>, vector<1x2x4xf32>
    %38 = vector.shape_cast %37 : vector<1x2x4xf32> to vector<2x4xf32>
    %cst_27 = arith.constant dense<0.000000e+00> : vector<2x4xf32>
    %39 = vector.multi_reduction <add>, %22, %cst_27 [2] : vector<2x4x128xf32> to vector<2x4xf32>
    %40 = arith.addf %38, %39 : vector<2x4xf32>
    %c0_28 = arith.constant 0 : index
    %c0_29 = arith.constant 0 : index
    %c0_30 = arith.constant 0 : index
    %41 = vector.load %arg6[%c0_28, %c0_29, %c0_30] : memref<1x2x4xf32, #tpu.memory_space<vmem>>, vector<1x2x4xf32>
    %42 = vector.shape_cast %41 : vector<1x2x4xf32> to vector<2x4xf32>
    %43 = vector.shape_cast %40 : vector<2x4xf32> to vector<1x2x4xf32>
    tpu.vector_store %arg6[%c0_28, %c0_29, %c0_30], %43 {strides = array<i32>} : memref<1x2x4xf32, #tpu.memory_space<vmem>>, vector<1x2x4xf32>,
    return
  }
  func.func @transform_0(%arg0: i32, %arg1: i32) -> (i32, i32, i32) {
    %c1_i32 = arith.constant 1 : i32
    %0 = arith.muli %arg0, %c1_i32 : i32
    %1 = arith.addi %0, %arg1 : i32
    %c0_i32 = arith.constant 0 : i32
    %c0_i32_0 = arith.constant 0 : i32
    %c0_i32_1 = arith.constant 0 : i32
    return %c0_i32, %c0_i32_0, %1 : i32, i32, i32
  }
  func.func @transform_1(%arg0: i32, %arg1: i32) -> (i32, i32, i32) {
    %c1_i32 = arith.constant 1 : i32
    %0 = arith.muli %arg0, %c1_i32 : i32
    %1 = arith.addi %0, %arg1 : i32
    %c0_i32 = arith.constant 0 : i32
    %c0_i32_0 = arith.constant 0 : i32
    %c0_i32_1 = arith.constant 0 : i32
    return %c0_i32, %c0_i32_0, %1 : i32, i32, i32
  }
  func.func @transform_2(%arg0: i32, %arg1: i32) -> (i32, i32, i32) {
    %c0_i32 = arith.constant 0 : i32
    %c0_i32_0 = arith.constant 0 : i32
    %c0_i32_1 = arith.constant 0 : i32
    return %arg0, %c0_i32, %c0_i32_0 : i32, i32, i32
  }
  func.func @transform_3(%arg0: i32, %arg1: i32) -> (i32, i32, i32) {
    %c0_i32 = arith.constant 0 : i32
    %c0_i32_0 = arith.constant 0 : i32
    %c0_i32_1 = arith.constant 0 : i32
    return %arg0, %c0_i32, %c0_i32_0 : i32, i32, i32
  }
  func.func @transform_4(%arg0: i32, %arg1: i32) -> (i32, i32, i32) {
    %c0_i32 = arith.constant 0 : i32
    %c0_i32_0 = arith.constant 0 : i32
    %c0_i32_1 = arith.constant 0 : i32
    return %arg0, %c0_i32, %c0_i32_0 : i32, i32, i32
  }
}

</mosaic_0001>

<bundles_post_ra>
// kernel: tpu_custom_call.1
= control target key start
LH: loop header
LB: loop body
LE: loop exit
PB: predicated region body
PF: predicated region fallthrough
CT: control target
= control target key end

     0   :  { %s1325_s0 = inlined_call_operand.hbm [shape: f32[2,4,256], index: 0, kind: input, shape index: {}]   ;;  %s1326_s1 = inlined_call_operand.hbm [shape: f32[2,4,256], index: 1, kind: input, shape index: {}]   ;;  %s1327_s2 = inlined_call_operand.hbm [shape: f32[2,2,4], index: 2, kind: output, shape index: {0}]   ;;  %s1328_s3 = inlined_call_operand.hbm [shape: f32[2,2,4], index: 3, kind: output, shape index: {1}]   ;;  %s1329_s4 = inlined_call_operand.hbm [shape: f32[2,2,4], index: 4, kind: output, shape index: {2}]  }
   0x1   :  { %1335 = sst [smem:[#allocation16_spill]] %s1325_s0 }
   0x2   :  { %10 = vsyncpa [#allocation3], 0 }
   0x3   :  { %12 = vsyncpa [#allocation3 + $0x1], 0 }
   0x4   :  { %13 = vsyncpa [#allocation6], 0 }
   0x5   :  { %15 = vsyncpa [#allocation6 + $0x1], 0 }
   0x6   :  { %16 = vsyncpa [#allocation4], 0 }
   0x7   :  { %18 = vsyncpa [#allocation4 + $0x1], 0 }
   0x8   :  { %19 = vsyncpa [#allocation9], 0 }
   0x9   :  { %21 = vsyncpa [#allocation9 + $0x1], 0  ;;  %s985_s15 = smov 0   ;;  %s987_s16 = smov 0  }
   0xa   :  { %s989_s17 = smov 0   ;;  %s991_s18 = smov 0  }
   0xb   :  { %s993_s19 = smov 0   ;;  %s995_s20 = smov 0  }
   0xc LB: > { %s1016_s21 = sadd.s32 4294967295, %s949_s20   ;;  %s1330_s22 = sadd.s32 4294967294, %s949_s20   ;;  %s949_s20 = sphi %s995_s20, %s27_s20   ;;  %s945_s19 = sphi %s993_s19, %s1355_s19   ;;  %s941_s18 = sphi %s991_s18, %s1354_s18   ;;  %s937_s17 = sphi %s989_s17, %s1353_s17   ;;  %s933_s16 = sphi %s987_s16, %s1352_s16   ;;  %s929_s15 = sphi %s985_s15, %s1351_s15  }
   0xd   : > { %s39_s23 = sadd.s32 1, %s945_s19  ;;  %s48_s24 = sadd.s32 1, %s937_s17 }
   0xe   : > { %p41_p0 = scmp.ge.s32.totalorder %s39_s23, 2  ;;  %p55_p1 = scmp.ne.s32.totalorder %s937_s17, %s933_s16 }
   0xf   : > { %p56_p2 = scmp.eq.s32.totalorder %s949_s20, 0  ;;  %p61_p3 = scmp.ne.s32.totalorder %s933_s16, %s929_s15 }
  0x10   : > { %s1357_s23 = smov (%p41_p0, %s39_s23), 0  ;;  %p62_p5 = scmp.eq.s32.totalorder %s1016_s21, 0 }
  0x11   : > { %1336 = sst [smem:[#allocation15_spill]] %s1357_s23  ;;  %p1028_p4 = por %p56_p2, %p55_p1 }
  0x12   : > { %s45_s26 = ssub.s32 %s945_s19, %s1357_s23  ;;  %p113_p6 = scmp.eq.s32.totalorder %s1016_s21, 1 }
  0x13   : > { %p46_p7 = scmp.eq.s32.totalorder %s45_s26, 0  ;;  %p1036_p8 = por %p62_p5, %p61_p3 }
  0x14   : > { %p1040_p9 = por %p113_p6, %p55_p1  ;;  %p119_p10 = scmp.eq.s32.totalorder %s1330_s22, 1 }
  0x15   : > { %s1338_s27 = scalar_select %p1036_p8, 1, 0 }
  0x16   : > { %s1339_s28 = scalar_select %p1040_p9, 1, 0 }
  0x17   : > { %s1047_s29 = scalar_select %p46_p7, %s937_s17, %s48_s24  }
  0x18   : > { %p1049_p11 = por %p119_p10, %p61_p3  ;;  %p677_p13 = scmp.lt.s32.totalorder %s949_s20, 2 }
  0x19   : > { %s1056_s5 = sand.u32 1, %s937_s17   ;;  %s633_s7 = sshll.u32 %s945_s19, 6 }
  0x1a   : > { %s1340_s30 = scalar_select %p1049_p11, 1, 0 }
  0x1b   : > { %s632_s6 = sshll.u32 %s1056_s5, 3  ;;  %s1341_s0 = sld [smem:[#allocation16_spill]] }
  0x1c   : > { %s195_s11 = scalar_lea.vmem [#allocation2], %s632_s6  ;;  %p1073_p0 = pnand %p677_p13, %p1028_p4 }
  0x1d   : > { %s202_s12 = sshll.u32 %s195_s11, 4  ;;  %s192_s14 = scalar_lea.sflag [#allocation3], %s1056_s5  ;;  %s1069_s12 = int_to_ptr.vmem [resolvable:$true] %s202_s12 }
  0x1e   : > { %p745_p2 = pneg %p1073_p0 }
  0x21   : > { %s1065_s10 = scalar_lea.hbm %s1341_s0, %s633_s7  ;;  %s748_s9 = scalar_lea.hbm %s1341_s0, 256 }
  0x22   : > { %s743_s24 = scalar_lea.hbm %s1065_s10, 128  ;;  %p749_p4 = scmp.lt.u32.totalorder %s1065_s10, %s1341_s0 }
  0x23   : > { %p744_p1 = scmp.ne.s32.totalorder %s1065_s10, %s743_s24  ;;  %p750_p6 = scmp.lt.u32.totalorder %s748_s9, %s743_s24 }
  0x24   : > { %p752_p10 = scmp.lt.u32.totalorder %s743_s24, %s1065_s10 }
  0x25   : > { %p746_p3 = pnand %p745_p2, %p744_p1  ;;  %p751_p7 = por %p750_p6, %p749_p4 }
  0x27   : > { %p747_p5 = pneg %p746_p3  ;;  %p753_p13 = por %p752_p10, %p751_p7 }
  0x29   : > { %p754_p12 = pnand %p753_p13, %p747_p5 }
  0x2b   : > { %757 = shalt.err (!%p754_p12)
}
  0x2c   : > { %s758_s22 = scalar_lea.vmem %s1069_s12, 128  ;;  %s951_s26 = smov [#allocation2]  }
  0x2d   : > { %p759_p1 = scmp.ne.s32.totalorder %s1069_s12, %s758_s22  ;;  %s763_s8 = sshll.u32 %s951_s26, 4  ;;  %s764_s8 = int_to_ptr.vmem [resolvable:$false] %s763_s8 }
  0x2e   : > { %s765_s25 = scalar_lea.vmem %s764_s8, 256  ;;  %p766_p9 = scmp.lt.s32.totalorder %s1069_s12, %s764_s8 }
  0x2f   : > { %p761_p3 = pnand %p759_p1, %p745_p2  ;;  %p767_p4 = scmp.lt.s32.totalorder %s765_s25, %s758_s22 }
  0x31   : > { %p762_p11 = pneg %p761_p3  ;;  %p768_p6 = por %p767_p4, %p766_p9 }
  0x33   : > { %p769_p7 = pnand %p768_p6, %p762_p11 }
  0x35   : > { %772 = shalt.err (!%p769_p7)
}
  0x36   : > { %s1333_s24 = smov 128   ;;  %s953_s9 = smov 64  }
  0x37   : > { %s954_s11 = smov 4   ;;  %p636_p9 = scmp.ge.s32.totalorder %s949_s20, 1 }
  0x38   : > { %663 = dma.hbm_to_vmem [thread:$0]  (!%p1073_p0), %s1065_s10, 128, %s1069_s12, %s192_s14, %s1333_s24, %s953_s9, %s954_s11  }
  0x39   : > { %p231_p11 = scmp.lt.s32.totalorder %s949_s20, 3  ;;  %s1119_s25 = scalar_lea.hbm %s1326_s1, %s633_s7 }
  0x3a   : > { %s216_s0 = scalar_lea.vmem [#allocation5], %s632_s6  ;;  %s213_s10 = scalar_lea.sflag [#allocation6], %s1056_s5 }
  0x3b   : > { %p1110_p12 = pnand %p636_p9, %p231_p11  ;;  %s223_s23 = sshll.u32 %s216_s0, 4  ;;  %s1123_s23 = int_to_ptr.vmem [resolvable:$true] %s223_s23 }
  0x3c   : > { %s773_s12 = scalar_lea.hbm %s1119_s25, 128  ;;  %s778_s7 = scalar_lea.hbm %s1326_s1, 256 }
  0x3d   : > { %p774_p5 = scmp.ne.s32.totalorder %s1119_s25, %s773_s12  ;;  %p779_p1 = scmp.lt.u32.totalorder %s1119_s25, %s1326_s1 }
  0x3e   : > { %p780_p3 = scmp.lt.u32.totalorder %s778_s7, %s773_s12  ;;  %p782_p6 = scmp.lt.u32.totalorder %s773_s12, %s1119_s25 }
  0x3f   : > { %p776_p10 = pnand %p774_p5, %p745_p2 }
  0x40   : > { %p781_p4 = por %p780_p3, %p779_p1 }
  0x41   : > { %p777_p13 = pneg %p776_p10 }
  0x42   : > { %p783_p7 = por %p782_p6, %p781_p4 }
  0x44   : > { %p784_p9 = pnand %p783_p7, %p777_p13 }
  0x46   : > { %787 = shalt.err (!%p784_p9)
}
  0x47   : > { %s788_s0 = scalar_lea.vmem %s1123_s23, 128  ;;  %s955_s6 = smov [#allocation5]  }
  0x48   : > { %p789_p11 = scmp.ne.s32.totalorder %s1123_s23, %s788_s0  ;;  %s793_s14 = sshll.u32 %s955_s6, 4  ;;  %s794_s14 = int_to_ptr.vmem [resolvable:$false] %s793_s14 }
  0x49   : > { %s795_s24 = scalar_lea.vmem %s794_s14, 256  ;;  %p796_p8 = scmp.lt.s32.totalorder %s1123_s23, %s794_s14 }
  0x4a   : > { %p791_p5 = pnand %p789_p11, %p745_p2  ;;  %p797_p1 = scmp.lt.s32.totalorder %s795_s24, %s788_s0 }
  0x4c   : > { %p792_p10 = pneg %p791_p5  ;;  %p798_p3 = por %p797_p1, %p796_p8 }
  0x4e   : > { %p799_p4 = pnand %p798_p3, %p792_p10 }
  0x50   : > { %802 = shalt.err (!%p799_p4)
}
  0x51   : > { %s1344_s12 = smov 128   ;;  %235 = sbr.rel (%p1110_p12) target bundleno = 346 (0x15a), region = 28 }
  0x52   : > { %666 = dma.hbm_to_vmem [thread:$0]  (!%p1073_p0), %s1119_s25, 128, %s1123_s23, %s213_s10, %s1344_s12, %s953_s9, %s954_s11  }
  0x53   : > { %s1157_s26 = sand.u32 (!%p1110_p12), 1, %s933_s16   ;;  %p1345_p8 = scmp.ne.s32.totalorder (!%p1110_p12), %s1338_s27, 0 }
  0x54   : > { %s637_s7 = sshll.u32 (!%p1110_p12), %s1157_s26, 3  ;;  %s238_s8 = scalar_lea.sflag (!%p1110_p12), [#allocation3], %s1157_s26 }
  0x55   : > { %s241_s13 = scalar_lea.vmem (!%p1110_p12), [#allocation2], %s637_s7 }
  0x58   : > { %912 = dma.done.wait (%p1345_p8), %s238_s8, 128  }
  0x59   : > { %914 = vsyncadd (%p1345_p8), %s238_s8, 4294967168  ;;  %s247_s23 = scalar_lea.sflag [#allocation6], %s1157_s26  ;;  %s250_s5 = scalar_lea.vmem [#allocation5], %s637_s7 }
  0x5a   : > { %916 = dma.done.wait (%p1345_p8), %s247_s23, 128  }
  0x5b   : > { %918 = vsyncadd (%p1345_p8), %s247_s23, 4294967168  ;;  %v300_v0 = vld [vmem:[%s241_s13] sm:$0xf]  ;;  %v301_v1 = vld [vmem:[%s241_s13 + $0x4] sm:$0xf]  ;;  %vm308_vm0 = vcmask 1043456   ;;  %v356_v51 = vlaneseq }
  0x5c   : > { %v304_v2 = vmul.f32 1.442695, %v300_v0  ;;  %v306_v3 = vmul.f32 1.442695, %v301_v1  ;;  %v303_v7 = vld [vmem:[%s250_s5 + $0x4] sm:$0xf] }
  0x5d   : > { %v302_v10 = vld [vmem:[%s250_s5] sm:$0xf]  ;;  %v336_v12 = vsub.f32 1.0, %v301_v1  ;;  %vm334_vm1 = vcmp.gt.f32.partialorder %v303_v7, 0.5  ;;  %v335_v15 = vsub.f32 1.0, %v300_v0  ;;  %s639_s27 = sshll.u32 %s1157_s26, 1 }
  0x5e   : > { %731 = vpow2.f32 %v304_v2  ;;  %vm333_vm2 = vcmp.gt.f32.partialorder %v302_v10, 0.5  ;;  %vm296_vm3 = vcmask 25600   ;;  %s1179_s9 = scalar_lea.vmem [#allocation7], %s639_s27  ;;  %v956_v50 = vmov 0.0   ;;  %s1183_s11 = scalar_lea.vmem [#allocation8], %s639_s27 }
  0x5f   : > { %733 = vpow2.f32 %v306_v3  ;;  %v338_v18 = vsel %vm334_vm1, %v301_v1, %v336_v12  ;;  %v337_v21 = vsel %vm333_vm2, %v300_v0, %v335_v15  ;;  %297 = vst.msk [vmem:[%s1179_s9] sm:$0x3] %vm296_vm3, %v956_v50  ;;  %298 = vst.msk [vmem:[%s1183_s11] sm:$0x3] %vm296_vm3, %v956_v50  ;;  %s1187_s22 = scalar_lea.vmem [#allocation10], %s639_s27  ;;  %v357_v52 = vand.u32 127, %v356_v51 }
  0x60   : > { %735 = vlog2.f32 %v338_v18  ;;  %299 = vst.msk [vmem:[%s1187_s22] sm:$0x3] %vm296_vm3, %v956_v50  ;;  %v359_v53 = vshrl.u32 %v356_v51, 7  ;;  %vm366_vm4 = vcmask 1041409   ;;  %s1193_s25 = sshll.u32 %s941_s18, 5  ;;  %s438_s10 = sshll.u32 %s1179_s9, 4  ;;  %s1206_s10 = int_to_ptr.vmem [resolvable:$true] %s438_s10 }
  0x61   : > { %737 = vlog2.f32 %v337_v21  ;;  %s419_s0 = sand.u32 1, %s1016_s21   ;;  %s451_s6 = sshll.u32 %s1183_s11, 4  ;;  %s1217_s6 = int_to_ptr.vmem [resolvable:$true] %s451_s6 }
  0x62   : > { %v360_v55 = vsub.s32 %v357_v52, %v359_v53  ;;  %s1204_s24 = scalar_lea.hbm %s1327_s2, %s1193_s25  ;;  %s1213_s8 = scalar_lea.hbm %s1328_s3, %s1193_s25 }
  0x63   : > { %s464_s13 = sshll.u32 %s1187_s22, 4  ;;  %s415_s23 = scalar_lea.sflag [#allocation4], %s1157_s26  ;;  %s465_s13 = int_to_ptr.vmem [resolvable:$true] %s464_s13 }
  0x64   : > { %s803_s5 = scalar_lea.vmem %s1206_s10, 32  ;;  %p1346_p2 = scmp.ne.s32.totalorder %s1339_s28, 0 }
  0x65   : > { %p804_p0 = scmp.ne.s32.totalorder %s1206_s10, %s803_s5  ;;  %s957_s27 = smov [#allocation7]  }
  0x66   : > { %v347_v59 = vld [vmem:[%s1179_s9] sm:$0x3]  ;;  %v372_v0 = vld [vmem:[%s1183_s11] sm:$0x3]  ;;  %s807_s14 = sshll.u32 %s957_s27, 4  ;;  %s808_s14 = int_to_ptr.vmem [resolvable:$false] %s807_s14 }
  0x67   : > { %p805_p12 = pnand %p804_p0, %p1346_p2  ;;  %s809_s18 = scalar_lea.vmem %s808_s14, 64 }
  0x68   : > { %v732_v4 = vpop.eup %731  ;;  %p810_p6 = scmp.lt.s32.totalorder %s1206_s10, %s808_s14  ;;  %p811_p7 = scmp.lt.s32.totalorder %s809_s18, %s803_s5 }
  0x69   : > { %v734_v5 = vpop.eup %733  ;;  %v309_v6 = vsel %vm308_vm0, %v732_v4, 0.0  ;;  %p806_p13 = pneg %p805_p12 }
  0x6a   : > { %v310_v8 = vrot.slane %v309_v6, 4  ;;  %v316_v9 = vsel %vm308_vm0, %v734_v5, 0.0  ;;  %v736_v26 = vpop.eup %735  ;;  %p812_p9 = por %p811_p7, %p810_p6 }
  0x6b   : > { %v317_v11 = vrot.slane %v316_v9, 4  ;;  %v738_v27 = vpop.eup %737  ;;  %v342_v28 = vmul.f32 0.6931472, %v736_v26 }
  0x6c   : > { %v311_v13 = vadd.f32 %v310_v8, %v309_v6  ;;  %v340_v32 = vmul.f32 0.6931472, %v738_v27  ;;  %v393_v8 = vld [vmem:[%s1187_s22] sm:$0x3]  ;;  %p813_p11 = pnand %p812_p9, %p806_p13 }
  0x6d   : > { %v318_v14 = vadd.f32 %v317_v11, %v316_v9  ;;  %v344_v36 = vmax.f32 %v342_v28, -100.0 }
  0x6e   : > { %v312_v16 = vrot.slane %v311_v13, 2  ;;  %v343_v41 = vmax.f32 %v340_v32, -100.0 }
  0x6f   : > { %v319_v17 = vrot.slane %v318_v14, 2  ;;  %v346_v45 = vsub.f32 0.0, %v344_v36 }
  0x70   : > { %v313_v19 = vadd.f32 %v312_v16, %v311_v13  ;;  %v345_v47 = vsub.f32 0.0, %v343_v41 }
  0x71   : > { %v320_v20 = vadd.f32 %v319_v17, %v318_v14  ;;  %v397_v48 = vsel %vm308_vm0, %v346_v45, 0.0 }
  0x72   : > { %v314_v22 = vrot.slane %v313_v19, 1  ;;  %v394_v49 = vsel %vm308_vm0, %v345_v47, 0.0 }
  0x73   : > { %v321_v23 = vrot.slane %v320_v20, 1 }
  0x74   : > { %v315_v24 = vadd.f32 %v314_v22, %v313_v19 }
  0x75   : > { %v322_v25 = vadd.f32 %v321_v23, %v320_v20 }
  0x76   : > { %739 = vrcp.f32 %v315_v24 }
  0x77   : > { %741 = vrcp.f32 %v322_v25 }
  0x80   : > { %v740_v29 = vpop.eup %739 }
  0x81   : > { %v742_v30 = vpop.eup %741  ;;  %v324_v31 = vmul.f32 %v740_v29, %v732_v4 }
  0x82   : > { %v326_v33 = vmul.f32 %v742_v30, %v734_v5 }
  0x83   : > { %v327_v34 = vmul.f32 %v324_v31, %v302_v10  ;;  %v329_v35 = vadd.f32 %v324_v31, %v302_v10 }
  0x84   : > { %v328_v37 = vmul.f32 %v326_v33, %v303_v7  ;;  %v330_v38 = vadd.f32 %v326_v33, %v303_v7 }
  0x85   : > { %v348_v39 = vsel %vm308_vm0, %v327_v34, 0.0  ;;  %v331_v40 = vsub.f32 %v329_v35, %v327_v34 }
  0x86   : > { %349 = vadd.xlane.f32.xlu1 %v348_v39  ;;  %v332_v42 = vsub.f32 %v330_v38, %v328_v37  ;;  %v351_v44 = vsel %vm308_vm0, %v328_v37, 0.0 }
  0x87   : > { %v373_v43 = vsel %vm308_vm0, %v331_v40, 0.0 }
  0x88   : > { %374 = vadd.xlane.f32.xlu0 %v373_v43  ;;  %v376_v46 = vsel %vm308_vm0, %v332_v42, 0.0 }
  0x8a   : > { %352 = vadd.xlane.f32.xlu1 %v351_v44 }
  0x8c   : > { %377 = vadd.xlane.f32.xlu0 %v376_v46 }
  0x8e   : > { %398 = vadd.xlane.f32.xlu1 %v397_v48 }
  0x90   : > { %395 = vadd.xlane.f32.xlu0 %v394_v49 }
 0x113   : > { %v350_v54 = vpop.xlane.xlu1 %349 }
 0x114   : > { %v361_v58 = vrot.slane %v350_v54, %v360_v55 }
 0x115   : > { %v375_v56 = vpop.xlane.xlu0 %374 }
 0x116   : > { %v384_v62 = vrot.slane %v375_v56, %v360_v55 }
 0x117   : > { %v353_v57 = vpop.xlane.xlu1 %352 }
 0x118   : > { %v365_v60 = vrot.slane %v353_v57, %v360_v55 }
 0x119   : > { %v378_v61 = vpop.xlane.xlu0 %377 }
 0x11a   : > { %v367_v63 = vsel %vm366_vm4, %v365_v60, %v361_v58  ;;  %v388_v1 = vrot.slane %v378_v61, %v360_v55 }
 0x11b   : > { %v369_v2 = vadd.f32 %v367_v63, %v347_v59  ;;  %v399_v3 = vpop.xlane.xlu1 %398 }
 0x11c   : > { %v389_v4 = vsel %vm366_vm4, %v388_v1, %v384_v62  ;;  %v409_v5 = vrot.slane %v399_v3, %v360_v55 }
 0x11d   : > { %371 = vst.msk [vmem:[%s1179_s9] sm:$0x3] %vm296_vm3, %v369_v2  ;;  %v391_v6 = vadd.f32 %v389_v4, %v372_v0  ;;  %v396_v7 = vpop.xlane.xlu0 %395 }
 0x11e   : > { %v405_v9 = vrot.slane %v396_v7, %v360_v55 }
 0x11f   : > { %816 = shalt.err (!%p813_p11)
}
 0x120   : > { %s817_s26 = scalar_lea.hbm %s1204_s24, 32  ;;  %s821_s7 = scalar_lea.hbm %s1327_s2, 64 }
 0x121   : > { %p818_p5 = scmp.ne.s32.totalorder %s1204_s24, %s817_s26  ;;  %p822_p3 = scmp.lt.u32.totalorder %s1204_s24, %s1327_s2 }
 0x122   : > { %p823_p4 = scmp.lt.u32.totalorder %s821_s7, %s817_s26  ;;  %p825_p0 = scmp.lt.u32.totalorder %s817_s26, %s1204_s24 }
 0x123   : > { %p819_p10 = pnand %p818_p5, %p1346_p2 }
 0x124   : > { %p824_p8 = por %p823_p4, %p822_p3 }
 0x125   : > { %p820_p1 = pneg %p819_p10 }
 0x126   : > { %p826_p12 = por %p825_p0, %p824_p8 }
 0x128   : > { %p827_p13 = pnand %p826_p12, %p820_p1 }
 0x12a   : > { %830 = shalt.err (!%p827_p13)
}
 0x12b   : > { %654 = dma.vmem_to_hbm [thread:$0]  (%p1346_p2), %s1206_s10, 32, %s1204_s24, %s415_s23   ;;  %392 = vst.msk [vmem:[%s1183_s11] sm:$0x3] %vm296_vm3, %v391_v6  ;;  %v410_v10 = vsel %vm366_vm4, %v409_v5, %v405_v9 }
 0x12c   : > { %s1248_s5 = scalar_lea.sflag [#allocation9], %s419_s0  ;;  %s831_s18 = scalar_lea.vmem %s1217_s6, 32 }
 0x12d   : > { %p832_p6 = scmp.ne.s32.totalorder %s1217_s6, %s831_s18  ;;  %s958_s26 = smov [#allocation8]  }
 0x12e   : > { %s835_s9 = sshll.u32 %s958_s26, 4  ;;  %s836_s9 = int_to_ptr.vmem [resolvable:$false] %s835_s9 }
 0x12f   : > { %p833_p7 = pnand %p832_p6, %p1346_p2  ;;  %s837_s12 = scalar_lea.vmem %s836_s9, 64 }
 0x130   : > { %p838_p11 = scmp.lt.s32.totalorder %s1217_s6, %s836_s9  ;;  %p839_p5 = scmp.lt.s32.totalorder %s837_s12, %s831_s18 }
 0x131   : > { %p834_p9 = pneg %p833_p7 }
 0x132   : > { %p840_p10 = por %p839_p5, %p838_p11 }
 0x134   : > { %p841_p1 = pnand %p840_p10, %p834_p9 }
 0x136   : > { %844 = shalt.err (!%p841_p1)
}
 0x137   : > { %s845_s21 = scalar_lea.hbm %s1213_s8, 32  ;;  %s849_s0 = scalar_lea.hbm %s1328_s3, 64 }
 0x138   : > { %p846_p3 = scmp.ne.s32.totalorder %s1213_s8, %s845_s21  ;;  %p850_p0 = scmp.lt.u32.totalorder %s1213_s8, %s1328_s3 }
 0x139   : > { %p851_p12 = scmp.lt.u32.totalorder %s849_s0, %s845_s21  ;;  %p853_p6 = scmp.lt.u32.totalorder %s845_s21, %s1213_s8 }
 0x13a   : > { %p847_p4 = pnand %p846_p3, %p1346_p2 }
 0x13b   : > { %p852_p13 = por %p851_p12, %p850_p0 }
 0x13c   : > { %p848_p8 = pneg %p847_p4 }
 0x13d   : > { %p854_p7 = por %p853_p6, %p852_p13 }
 0x13f   : > { %p855_p9 = pnand %p854_p7, %p848_p8 }
 0x141   : > { %858 = shalt.err (!%p855_p9)
}
 0x142   : > { %655 = dma.vmem_to_hbm [thread:$0]  (%p1346_p2), %s1217_s6, 32, %s1213_s8, %s1248_s5   ;;  %v412_v11 = vadd.f32 %v410_v10, %v393_v8 }
 0x143   : > { %s1276_s14 = scalar_lea.hbm %s1329_s4, %s1193_s25  ;;  %s859_s18 = scalar_lea.vmem %s465_s13, 32 }
 0x144   : > { %413 = vst.msk [vmem:[%s1187_s22] sm:$0x3] %vm296_vm3, %v412_v11  ;;  %p860_p11 = scmp.ne.s32.totalorder %s465_s13, %s859_s18  ;;  %s959_s26 = smov [#allocation10]  }
 0x145   : > { %s863_s9 = sshll.u32 %s959_s26, 4  ;;  %s864_s9 = int_to_ptr.vmem [resolvable:$false] %s863_s9 }
 0x146   : > { %p861_p5 = pnand %p860_p11, %p1346_p2  ;;  %s865_s12 = scalar_lea.vmem %s864_s9, 64 }
 0x147   : > { %p866_p1 = scmp.lt.s32.totalorder %s465_s13, %s864_s9  ;;  %p867_p3 = scmp.lt.s32.totalorder %s865_s12, %s859_s18 }
 0x148   : > { %p862_p10 = pneg %p861_p5 }
 0x149   : > { %p868_p4 = por %p867_p3, %p866_p1 }
 0x14b   : > { %p869_p8 = pnand %p868_p4, %p862_p10 }
 0x14d   : > { %872 = shalt.err (!%p869_p8)
}
 0x14e   : > { %s873_s22 = scalar_lea.hbm %s1276_s14, 32  ;;  %s877_s8 = scalar_lea.hbm %s1329_s4, 64 }
 0x14f   : > { %p874_p0 = scmp.ne.s32.totalorder %s1276_s14, %s873_s22  ;;  %p878_p6 = scmp.lt.u32.totalorder %s1276_s14, %s1329_s4 }
 0x150   : > { %p879_p7 = scmp.lt.u32.totalorder %s877_s8, %s873_s22  ;;  %p881_p11 = scmp.lt.u32.totalorder %s873_s22, %s1276_s14 }
 0x151   : > { %p875_p12 = pnand %p874_p0, %p1346_p2 }
 0x152   : > { %p880_p9 = por %p879_p7, %p878_p6 }
 0x153   : > { %p876_p13 = pneg %p875_p12 }
 0x154   : > { %p882_p5 = por %p881_p11, %p880_p9 }
 0x156   : > { %p883_p10 = pnand %p882_p5, %p876_p13 }
 0x158   : > { %886 = shalt.err (!%p883_p10)
}
 0x159   : > { %656 = dma.vmem_to_hbm [thread:$0]  (%p1346_p2), %s465_s13, 32, %s1276_s14, %s1248_s5  }
 0x15a PF: > { %s476_s10 = sand.u32 1, %s929_s15   ;;  %p1347_p1 = scmp.ne.s32.totalorder %s1340_s30, 0 }
 0x15b   : > { %p1348_p3 = scmp.ge.s32.totalorder %s949_s20, 2  ;;  %s477_s0 = scalar_lea.sflag [#allocation4], %s476_s10 }
 0x15d   : > { %p668_p4 = pnand %p1348_p3, %p1347_p1 }
 0x15f   : > { %920 = dma.done.wait (!%p668_p4), %s477_s0, 32  }
 0x160   : > { %922 = vsyncadd (!%p668_p4), %s477_s0, 4294967264  ;;  %s1349_s24 = sadd.s32 4294967294, %s949_s20  }
 0x161   : > { %s485_s23 = sand.u32 1, %s1349_s24  }
 0x162   : > { %s486_s7 = scalar_lea.sflag [#allocation9], %s485_s23 }
 0x163   : > { %924 = dma.done.wait (!%p668_p4), %s486_s7, 64  }
 0x164   : > { %926 = vsyncadd (!%p668_p4), %s486_s7, 4294967232  ;;  %s27_s20 = sadd.s32 1, %s949_s20   ;;  %s1350_s28 = sld [smem:[#allocation15_spill]] }
 0x165   : > { %p24_p2 = scmp.ge.s32.totalorder %s27_s20, 4   ;;  %s1351_s15 = smov %s933_s16 }
 0x166   : > { %s1352_s16 = smov %s937_s17  ;;  %s1353_s17 = smov %s1047_s29 }
 0x167   : > { %s1354_s18 = smov %s945_s19  ;;  %26 = sbr.rel (!%p24_p2) target bundleno = 12 (0xc), region = 122 }
 0x16a   : > { %s1355_s19 = smov %s1350_s28 }
 0x16e   :  { %500 = vsyncpa [#allocation3], 1 }
 0x16f   :  { %502 = vsyncpa [#allocation3 + $0x1], 1 }
 0x170   :  { %503 = vsyncpa [#allocation6], 1 }
 0x171   :  { %505 = vsyncpa [#allocation6 + $0x1], 1 }
 0x172   :  { %506 = vsyncpa [#allocation4], 1 }
 0x173   :  { %508 = vsyncpa [#allocation4 + $0x1], 1 }
 0x174   :  { %509 = vsyncpa [#allocation9], 1 }
 0x175   :  { %511 = vsyncpa [#allocation9 + $0x1], 1 }

</bundles_post_ra>
